<compile_context>
chip_gen: v7x
topology: tpu7x:2x2x1
jax: 0.10.0
libtpu: 0.0.40
codegen_flags: <defaults>
</compile_context>

<pallas_src>
import jax
import jax.numpy as jnp
from jax import lax
from jax.experimental import pallas as pl
from jax.experimental.pallas import tpu as pltpu


def network_fwd_kernel(x_ref, w1_ref, b1_ref, w2_ref, b2_ref, o_ref):
    # x_ref:  [TB, K]   (K = 4)
    # w1_ref: [K, H]    (H = 128)
    # b1_ref: [1, H]
    # w2_ref: [A, H]    (lane-dense on H)
    # b2_ref: [A, 1]
    # o_ref:  [A, TB]   (lane-dense on the batch axis)

    # --- Hidden layer on the MXU (tiny-K GEMM; keeps the VALU slots free).
    h = jnp.dot(x_ref[...], w1_ref[...], preferred_element_type=jnp.float32)
    h = jnp.maximum(h + b1_ref[...], 0.0)                      # [TB, H]

    # --- Policy head, produced transposed: contract both H axes -> [A, TB].
    logits = lax.dot_general(
        w2_ref[...], h,
        dimension_numbers=(((1,), (1,)), ((), ())),
        preferred_element_type=jnp.float32)                    # [A, TB]
    logits = logits + b2_ref[...]                              # sublane-broadcast bias

    a_dim = w2_ref.shape[0]
    if a_dim == 2:
        # Binary softmax == logistic: one EUP exp + one exact divide per tile,
        # rows sum to 1 exactly by construction (p0 = 1 - p1).
        d = logits[0:1, :] - logits[1:2, :]                    # l0 - l1, [1, TB]
        p1 = 1.0 / (1.0 + jnp.exp(d))                          # sigmoid(l1 - l0)
        o_ref[0:1, :] = (1.0 - p1).astype(o_ref.dtype)
        o_ref[1:2, :] = p1.astype(o_ref.dtype)
    else:
        # General A: numerically-stable softmax over the (small) sublane axis.
        m = jnp.max(logits, axis=0, keepdims=True)             # [1, TB]
        e = jnp.exp(logits - m)                                # [A, TB]
        probs = e / jnp.sum(e, axis=0, keepdims=True)          # exact divide
        o_ref[...] = probs.astype(o_ref.dtype)


def prepare_params(w1, b1, w2, b2):
    """One-time layout prep (call once per policy update, NOT per forward).

    w1: [H, K] -> [K, H]   (contraction layout for the MXU GEMM)
    b1: [H]    -> [1, H]
    w2: [A, H] -> kept as-is (lane-dense on H; contracted as the last axis)
    b2: [A]    -> [A, 1]   (sublane-broadcast against the [A, TB] logits)
    """
    return (jnp.transpose(w1), b1.reshape(1, -1), w2, b2.reshape(-1, 1))


def network_forward(x, params):
    """x: [B, K] float32; params from prepare_params(). Returns [B, A] probs."""
    w1_t, b1_r, w2, b2_c = params
    B, K = x.shape
    H = w1_t.shape[1]
    A = w2.shape[0]

    # Tile sizing: VMEM is irrelevant here (<1 MiB footprint); the trade-off is
    # vreg live-range of h [TILE_B, 128] vs. the ~0.35us per-grid-step cost.
    # Small batches run as a single tile; large batches use multiples of 128
    # (legal lane-dense output blocks) with >= 2 steps for v7x's 2 TensorCores.
    if B <= 256:
        TILE_B = B
    else:
        TILE_B = min(512, 128 * pl.cdiv(pl.cdiv(B, 2), 128))
    grid = (pl.cdiv(B, TILE_B),)

    probs_t = pl.pallas_call(
        network_fwd_kernel,
        out_shape=jax.ShapeDtypeStruct((A, B), jnp.float32),
        grid=grid,
        in_specs=[
            pl.BlockSpec((TILE_B, K), lambda i: (i, 0)),   # x: streamed per tile
            pl.BlockSpec((K, H), lambda i: (0, 0)),        # W1^T: resident
            pl.BlockSpec((1, H), lambda i: (0, 0)),        # b1: resident
            pl.BlockSpec((A, H), lambda i: (0, 0)),        # W2 (lane-dense): resident
            pl.BlockSpec((A, 1), lambda i: (0, 0)),        # b2 column: resident
        ],
        out_specs=pl.BlockSpec((A, TILE_B), lambda i: (0, i)),  # lane-dense output
        compiler_params=pltpu.CompilerParams(
            dimension_semantics=("parallel",)),
    )(x, w1_t, b1_r, w2, b2_c)

    # Module semantics return probs[b, a]; transposing the tiny [A, B] slab in
    # the wrapper is negligible layout plumbing.
    return probs_t.T


def init_params(key, in_dim=4, hidden=128, actions=2):
    """Deterministic init mimicking PyTorch Linear default U(-1/sqrt(fan_in), +)."""
    k1, k2, k3, k4 = jax.random.split(key, 4)
    bnd1 = 1.0 / jnp.sqrt(in_dim)
    bnd2 = 1.0 / jnp.sqrt(hidden)
    w1 = jax.random.uniform(k1, (hidden, in_dim), jnp.float32, -bnd1, bnd1)
    b1 = jax.random.uniform(k2, (hidden,), jnp.float32, -bnd1, bnd1)
    w2 = jax.random.uniform(k3, (actions, hidden), jnp.float32, -bnd2, bnd2)
    b2 = jax.random.uniform(k4, (actions,), jnp.float32, -bnd2, bnd2)
    return w1, b1, w2, b2


# TODO(synk): `train` (Adam update) and `sample_action` (Categorical sampling /
# log_prob) are host-side RL plumbing; fusing sampling + log-prob into this
# pallas_call (pltpu.prng_seed / prng_random_bits) would remove per-step
# dispatch overhead but changes the module's return signature, so it is left out.

if __name__ == "__main__":
    key = jax.random.PRNGKey(0)
    k_x, k_p = jax.random.split(key)

    B, IN_DIM, HIDDEN, ACTIONS = 8, 4, 128, 2   # CartPole-like: 4 obs, 2 actions
    x = jax.random.normal(k_x, (B, IN_DIM), dtype=jnp.float32)
    w1, b1, w2, b2 = init_params(k_p, IN_DIM, HIDDEN, ACTIONS)

    # Layout prep happens ONCE, outside the per-step forward path.
    params = prepare_params(w1, b1, w2, b2)

    probs = jax.block_until_ready(network_forward(x, params))

    # Pure-JAX reference.
    h_ref = jnp.maximum(x @ w1.T + b1, 0.0)
    ref = jax.nn.softmax(h_ref @ w2.T + b2, axis=-1)

    assert probs.shape == (B, ACTIONS)
    assert jnp.allclose(probs, ref, atol=1e-4, rtol=1e-4)
    assert jnp.allclose(jnp.sum(probs, axis=-1), 1.0, atol=1e-5)

    print("KERNEL_OK")
</pallas_src>

<mosaic_0001>
module attributes {stable_mosaic.version = 11 : i64} {
  func.func @network_fwd_kernel(%arg0: i32, %arg1: memref<8x4xf32, #tpu.memory_space<vmem>>, %arg2: memref<4x128xf32, #tpu.memory_space<vmem>>, %arg3: memref<1x128xf32, #tpu.memory_space<vmem>>, %arg4: memref<2x128xf32, #tpu.memory_space<vmem>>, %arg5: memref<2x1xf32, #tpu.memory_space<vmem>>, %arg6: memref<2x8xf32, #tpu.memory_space<vmem>>) attributes {dimension_semantics = [#tpu.dimension_semantics<parallel>], iteration_bounds = array<i64: 1>, scalar_prefetch = 0 : i64, scratch_operands = 0 : i64, tpu.core_type = #tpu.core_type<tc>, window_params = [{transform_indices = @transform_0, window_bounds = array<i64: 8, 4>}, {pipeline_mode = #tpu.pipeline_mode<synchronous>, transform_indices = @transform_1, window_bounds = array<i64: 4, 128>}, {pipeline_mode = #tpu.pipeline_mode<synchronous>, transform_indices = @transform_2, window_bounds = array<i64: 1, 128>}, {pipeline_mode = #tpu.pipeline_mode<synchronous>, transform_indices = @transform_3, window_bounds = array<i64: 2, 128>}, {pipeline_mode = #tpu.pipeline_mode<synchronous>, transform_indices = @transform_4, window_bounds = array<i64: 2, 1>}, {transform_indices = @transform_5, window_bounds = array<i64: 2, 8>}]} {
    %c0 = arith.constant 0 : index
    %c0_0 = arith.constant 0 : index
    %0 = vector.load %arg1[%c0, %c0_0] : memref<8x4xf32, #tpu.memory_space<vmem>>, vector<8x4xf32>
    %c0_1 = arith.constant 0 : index
    %c0_2 = arith.constant 0 : index
    %1 = vector.load %arg2[%c0_1, %c0_2] : memref<4x128xf32, #tpu.memory_space<vmem>>, vector<4x128xf32>
    %cst = arith.constant dense<0.000000e+00> : vector<8x128xf32>
    %2 = tpu.matmul %0, %1, %cst {dimension_numbers = #tpu.dot_dimension_numbers<[1], [0], [0], [1], [0, 0, 1, 1], [], []>} : vector<8x4xf32>, vector<4x128xf32>, vector<8x128xf32> -> vector<8x128xf32>
    %c0_3 = arith.constant 0 : index
    %c0_4 = arith.constant 0 : index
    %3 = vector.load %arg3[%c0_3, %c0_4] : memref<1x128xf32, #tpu.memory_space<vmem>>, vector<1x128xf32>
    %4 = vector.broadcast %3 : vector<1x128xf32> to vector<8x128xf32>
    %5 = arith.addf %2, %4 : vector<8x128xf32>
    %cst_5 = arith.constant 0.000000e+00 : f32
    %6 = vector.broadcast %cst_5 : f32 to vector<8x128xf32>
    %7 = arith.maximumf %5, %6 : vector<8x128xf32>
    %c0_6 = arith.constant 0 : index
    %c0_7 = arith.constant 0 : index
    %8 = vector.load %arg4[%c0_6, %c0_7] : memref<2x128xf32, #tpu.memory_space<vmem>>, vector<2x128xf32>
    %cst_8 = arith.constant dense<0.000000e+00> : vector<2x8xf32>
    %9 = tpu.matmul %8, %7, %cst_8 {dimension_numbers = #tpu.dot_dimension_numbers<[1], [1], [0], [0], [0, 0, 1, 0], [], []>} : vector<2x128xf32>, vector<8x128xf32>, vector<2x8xf32> -> vector<2x8xf32>
    %c0_9 = arith.constant 0 : index
    %c0_10 = arith.constant 0 : index
    %10 = vector.load %arg5[%c0_9, %c0_10] : memref<2x1xf32, #tpu.memory_space<vmem>>, vector<2x1xf32>
    %11 = vector.broadcast %10 : vector<2x1xf32> to vector<2x8xf32>
    %12 = arith.addf %9, %11 : vector<2x8xf32>
    %13 = vector.extract_strided_slice %12 {offsets = [0, 0], sizes = [1, 8], strides = [1, 1]} : vector<2x8xf32> to vector<1x8xf32>
    %14 = vector.extract_strided_slice %12 {offsets = [1, 0], sizes = [1, 8], strides = [1, 1]} : vector<2x8xf32> to vector<1x8xf32>
    %15 = arith.subf %13, %14 : vector<1x8xf32>
    %16 = math.exp %15 : vector<1x8xf32>
    %cst_11 = arith.constant 1.000000e+00 : f32
    %17 = vector.broadcast %cst_11 : f32 to vector<1x8xf32>
    %18 = arith.addf %17, %16 : vector<1x8xf32>
    %cst_12 = arith.constant 1.000000e+00 : f32
    %19 = vector.broadcast %cst_12 : f32 to vector<1x8xf32>
    %20 = arith.divf %19, %18 : vector<1x8xf32>
    %cst_13 = arith.constant 1.000000e+00 : f32
    %21 = vector.broadcast %cst_13 : f32 to vector<1x8xf32>
    %22 = arith.subf %21, %20 : vector<1x8xf32>
    %c0_14 = arith.constant 0 : index
    %c0_15 = arith.constant 0 : index
    %23 = vector.load %arg6[%c0_14, %c0_15] : memref<2x8xf32, #tpu.memory_space<vmem>>, vector<1x8xf32>
    tpu.vector_store %arg6[%c0_14, %c0_15], %22 {strides = array<i32>} : memref<2x8xf32, #tpu.memory_space<vmem>>, vector<1x8xf32>,
    %c1 = arith.constant 1 : index
    %c0_16 = arith.constant 0 : index
    %24 = vector.load %arg6[%c1, %c0_16] : memref<2x8xf32, #tpu.memory_space<vmem>>, vector<1x8xf32>
    tpu.vector_store %arg6[%c1, %c0_16], %20 {strides = array<i32>} : memref<2x8xf32, #tpu.memory_space<vmem>>, vector<1x8xf32>,
    return
  }
  func.func @transform_0(%arg0: i32) -> (i32, i32) {
    %c0_i32 = arith.constant 0 : i32
    %c0_i32_0 = arith.constant 0 : i32
    return %arg0, %c0_i32 : i32, i32
  }
  func.func @transform_1(%arg0: i32) -> (i32, i32) {
    %c0_i32 = arith.constant 0 : i32
    %c0_i32_0 = arith.constant 0 : i32
    %c0_i32_1 = arith.constant 0 : i32
    return %c0_i32, %c0_i32_0 : i32, i32
  }
  func.func @transform_2(%arg0: i32) -> (i32, i32) {
    %c0_i32 = arith.constant 0 : i32
    %c0_i32_0 = arith.constant 0 : i32
    %c0_i32_1 = arith.constant 0 : i32
    return %c0_i32, %c0_i32_0 : i32, i32
  }
  func.func @transform_3(%arg0: i32) -> (i32, i32) {
    %c0_i32 = arith.constant 0 : i32
    %c0_i32_0 = arith.constant 0 : i32
    %c0_i32_1 = arith.constant 0 : i32
    return %c0_i32, %c0_i32_0 : i32, i32
  }
  func.func @transform_4(%arg0: i32) -> (i32, i32) {
    %c0_i32 = arith.constant 0 : i32
    %c0_i32_0 = arith.constant 0 : i32
    %c0_i32_1 = arith.constant 0 : i32
    return %c0_i32, %c0_i32_0 : i32, i32
  }
  func.func @transform_5(%arg0: i32) -> (i32, i32) {
    %c0_i32 = arith.constant 0 : i32
    %c0_i32_0 = arith.constant 0 : i32
    return %c0_i32, %arg0 : i32, i32
  }
}

</mosaic_0001>

<bundles_post_ra>
// kernel: tpu_custom_call.1
= control target key start
LH: loop header
LB: loop body
LE: loop exit
PB: predicated region body
PF: predicated region fallthrough
CT: control target
= control target key end

     0   :  { %vm34_vm0 = vcmask 1043456   ;;  %v263_v2 = vmov 0.0   ;;  %vm264_vm1 = vmmov 0   ;;  %vm30_vm2 = vcmask 31744   ;;  %s324_s0 = inlined_call_operand.vmem [shape: f32[8,4], index: 0, kind: input, shape index: {}]   ;;  %s325_s1 = inlined_call_operand.vmem [shape: f32[4,128], index: 1, kind: input, shape index: {}]   ;;  %s326_s2 = inlined_call_operand.vmem [shape: f32[1,128], index: 2, kind: input, shape index: {}]   ;;  %s327_s3 = inlined_call_operand.vmem [shape: f32[2,128], index: 3, kind: input, shape index: {}]   ;;  %s328_s4 = inlined_call_operand.vmem [shape: f32[2,1], index: 4, kind: input, shape index: {}]   ;;  %s329_s5 = inlined_call_operand.hbm [shape: f32[2,8], index: 5, kind: output, shape index: {}]  }
   0x1   :  { %v22_v0 = vld [vmem:[%s325_s1] sm:$0xf]  ;;  %220 = vmatprep.subr.mxu0 %v263_v2  ;;  %222 = vmatprep.mubr.msk.f32.mxu0 %vm264_vm1, %v263_v2 }
   0x2   :  { %v21_v1 = vld [vmem:[%s324_s0] sm:$0xff] }
   0x3   :  { %10 = vsyncpa [#allocation3], 0  ;;  %221 = vmatpush3.msk.msra.mxu0 %vm34_vm0, %v22_v0  ;;  %225 = vmatprep.subr.mxu1 %v263_v2  ;;  %v110_v3 = vld [vmem:[%s328_s4] sm:$0x3]  ;;  %v265_v4 = vmov 0   ;;  %vm196_vm3 = vcmask 57344  }
   0x4   :  { %223 = vmatmul.mubr.msk.f32.vlgmr.msra.gmra.mrb[0].mxu0 %vm30_vm2, %v21_v1  ;;  %227 = vmatprep.mubr.msk.f32.mxu1 %vm264_vm1, %v263_v2  ;;  %v213_v5 = vld [vmem:[%s326_s2] ss:$0 sm:$0xff]  ;;  %s266_s2 = smov [#allocation2]  }
   0x5   :  { %234 = vset.pattern.permute.xlu0 %v265_v4  ;;  %v109_v10 = vld [vmem:[%s327_s3] sm:$0x3]  ;;  %s205_s4 = sshll.u32 %s266_s2, 4  ;;  %s206_s4 = int_to_ptr.vmem [resolvable:$true] %s205_s4 }
   0x6   :  { %113 = vperm.xlu0 %234, %v110_v3   ;;  %s239_s3 = scalar_lea.vmem %s206_s4, 32  ;;  %p244_p1 = scmp.lt.s32.totalorder %s206_s4, %s206_s4 }
   0x7   :  { %p240_p0 = scmp.ne.s32.totalorder %s206_s4, %s239_s3  ;;  %p245_p2 = scmp.lt.s32.totalorder %s239_s3, %s239_s3 }
   0x9   :  { %p246_p3 = por %p245_p2, %p244_p1 }
   0xb   :  { %p247_p4 = pnand %p246_p3, %p240_p0 }
  0x85   :  { %v114_v11 = vpop.permute.xlu0 %113 }
  0xd7   :  { %v104_v6 = vpop.f32.mrb[0].mxu0 }
  0xd8   :  { %v105_v7 = vadd.f32 %v213_v5, %v104_v6  ;;  %v224_v8 = vpop.f32.mrb[1].mxu0 }
  0xda   :  { %v108_v9 = vmax.f32 %v105_v7, 0.0 }
  0xdc   :  { %226 = vmatpush3.xpose.msra.mxu1 %v108_v9 }
  0xdf   :  { %228 = vmatmul.mubr.f32.vlgmr.msra.gmra.mrb[0].mxu1 %v109_v10 }
 0x1b2   :  { %v182_v12 = vpop.f32.mrb[0].mxu1 }
 0x1b3   :  { %v183_v13 = vadd.f32 %v182_v12, %v114_v11  ;;  %v229_v14 = vpop.f32.mrb[1].mxu1 }
 0x1b5   :  { %v187_v15 = vrot.slane %v183_v13, 1 }
 0x1b7   :  { %v189_v16 = vsub.f32 %v183_v13, %v187_v15 }
 0x1b9   :  { %v190_v17 = vmul.f32 1.442695, %v189_v16 }
 0x1bb   :  { %235 = vpow2.f32 %v190_v17 }
 0x1c5   :  { %v236_v18 = vpop.eup %235 }
 0x1c6   :  { %v192_v19 = vadd.f32 1.0, %v236_v18 }
 0x1c8   :  { %237 = vrcp.f32 %v192_v19 }
 0x1d2   :  { %v238_v20 = vpop.eup %237 }
 0x1d3   :  { %v195_v21 = vsub.f32 1.0, %v238_v20  ;;  %198 = vst.msk [vmem:[#allocation2 + $0x1] sm:$0x1] %vm196_vm3, %v238_v20 }
 0x1d5   :  { %197 = vst.msk [vmem:[#allocation2] sm:$0x1] %vm196_vm3, %v195_v21 }
 0x1d6   :  { %250 = shalt.err (!%p247_p4)
}
 0x1d7   :  { %s251_s28 = scalar_lea.hbm %s329_s5, 32 }
 0x1d8   :  { %p252_p5 = scmp.ne.s32.totalorder %s329_s5, %s251_s28  ;;  %p255_p6 = scmp.lt.u32.totalorder %s251_s28, %s329_s5 }
 0x1da   :  { %p257_p7 = pnand %p255_p6, %p252_p5 }
 0x1dc   :  { %260 = shalt.err (!%p257_p7)
}
 0x1dd   :  { %208 = dma.vmem_to_hbm [thread:$0]  %s206_s4, 32, %s329_s5, [#allocation3]  }
 0x1de   :  { %261 = dma.done.wait [#allocation3], 32  }
 0x1df   :  { %262 = vsyncadd [#allocation3], 4294967264 }
 0x1e0   :  { %212 = vsyncpa [#allocation3], 1 }

</bundles_post_ra>
